<compile_context>
chip_gen: v5e
topology: v5e:2x2
jax: 0.10.0
libtpu: 0.0.40
codegen_flags: <defaults>
</compile_context>

<pallas_src>
import functools
import math

import jax
import jax.numpy as jnp
from jax.experimental import pallas as pl
from jax.experimental.pallas import tpu as pltpu

_RESIDENT_MAX_BYTES = 12 * 1024 * 1024   # per-copy budget for a VMEM-resident s


def _round_up(v, m):
    return ((v + m - 1) // m) * m


def _pad2(a, rows, cols):
    return jnp.pad(a, ((0, rows - a.shape[0]), (0, cols - a.shape[1])))


def _vmem_limit_bytes():
    """Generation-aware scoped-VMEM limit with a safe fallback."""
    try:
        cap = pltpu.get_tpu_info().vmem_capacity_bytes
    except Exception:
        return 48 * 1024 * 1024
    return int(max(32 * 1024 * 1024, min(cap * 3 // 4, 96 * 1024 * 1024)))


def _pick_tiles(Np):
    """Adaptive block sizes.  k_tile as big as divides Np (DMA / step-overhead
    amortization); row_tile big but leaving >= 2 row tiles so the 'parallel'
    axis can shard across both TensorCores on v7x."""
    def pick(cands, min_tiles):
        for c in cands:
            if Np % c == 0 and Np // c >= min_tiles:
                return c
        return min(Np, 128)

    k_tile = pick((1024, 512, 256, 128), 1)
    row_tile = pick((512, 256, 128), 2)
    return row_tile, k_tile


# ---------------------------------------------------------------------------
# Kernel bodies
# ---------------------------------------------------------------------------
def support_kernel(x_ref, w_ref, o_ref):
    """gc1 support: s1 = relu(x @ W1) for one row tile (row axis 'parallel')."""
    s = jnp.dot(x_ref[...], w_ref[...], preferred_element_type=jnp.float32)
    o_ref[...] = jnp.maximum(s, 0.0).astype(o_ref.dtype)


def agg_support_kernel(adj_ref, s_ref, b_ref, wn_ref, o_ref, acc_ref,
                       *, k_tile, s_resident):
    """Fused: h = relu(adj @ s1 + b1)  (gc1 aggregation + GCN outer relu),
    dropout (identity at inference), then s2 = relu(h @ W2)  (gc2 support).

    Grid = (row tiles, K tiles); K (reduction over adj columns) is the last,
    'arbitrary' axis; acc_ref is the f32 accumulator resident in VMEM.
    If s_resident, s_ref holds the whole (Np, Hp) matrix (DMA'd once) and is
    sliced per K step; otherwise s_ref is a (k_tile, Hp) streamed block.
    """
    k = pl.program_id(1)

    @pl.when(k == 0)
    def _():
        acc_ref[...] = jnp.zeros_like(acc_ref)

    if s_resident:
        off = pl.multiple_of(k * k_tile, k_tile)
        s_blk = s_ref[pl.ds(off, k_tile), :]
    else:
        s_blk = s_ref[...]

    acc_ref[...] += jnp.dot(adj_ref[...], s_blk,
                            preferred_element_type=jnp.float32)

    @pl.when(k == pl.num_programs(1) - 1)
    def _():
        # f32 epilogue: gc1 output + bias, outer relu (dropout = identity).
        h = jnp.maximum(acc_ref[...] + b_ref[...], 0.0)
        s_next = jnp.dot(h.astype(wn_ref.dtype), wn_ref[...],
                         preferred_element_type=jnp.float32)
        o_ref[...] = jnp.maximum(s_next, 0.0).astype(o_ref.dtype)


def agg_kernel(adj_ref, s_ref, b_ref, o_ref, acc_ref, *, k_tile, s_resident):
    """gc2 aggregation: y = adj @ s2 + b2, same row/K tiling as above."""
    k = pl.program_id(1)

    @pl.when(k == 0)
    def _():
        acc_ref[...] = jnp.zeros_like(acc_ref)

    if s_resident:
        off = pl.multiple_of(k * k_tile, k_tile)
        s_blk = s_ref[pl.ds(off, k_tile), :]
    else:
        s_blk = s_ref[...]

    acc_ref[...] += jnp.dot(adj_ref[...], s_blk,
                            preferred_element_type=jnp.float32)

    @pl.when(k == pl.num_programs(1) - 1)
    def _():
        o_ref[...] = (acc_ref[...] + b_ref[...]).astype(o_ref.dtype)


# ---------------------------------------------------------------------------
# Wrappers
# ---------------------------------------------------------------------------
def prepare_gcn_operands(x, adj, w1, b1, w2, b2):
    """Pad + cast once per graph (hoisted out of the per-call jitted path)."""
    N, F = x.shape
    H = w1.shape[1]
    C = w2.shape[1]

    lane = 128
    Np = _round_up(N, lane)
    Fp = _round_up(F, lane)
    Hp = _round_up(H, lane)
    Cp = _round_up(C, lane)
    row_tile, k_tile = _pick_tiles(Np)

    bf16, f32 = jnp.bfloat16, jnp.float32
    ops = dict(
        xp=_pad2(x.astype(bf16), Np, Fp),
        adjp=_pad2(adj.astype(bf16), Np, Np),
        w1p=_pad2(w1.astype(bf16), Fp, Hp),
        w2p=_pad2(w2.astype(bf16), Hp, Cp),
        b1p=_pad2(b1.astype(f32).reshape(1, -1), 1, Hp),
        b2p=_pad2(b2.astype(f32).reshape(1, -1), 1, Cp),
    )
    meta = dict(N=N, C=C, row_tile=row_tile, k_tile=k_tile)
    return ops, meta


def gcn_forward_padded(xp, adjp, w1p, b1p, w2p, b2p, *, N, C, row_tile, k_tile):
    """2-layer GCN forward on pre-padded, pre-cast (bf16) operands."""
    Np, Fp = xp.shape
    Hp = w1p.shape[1]
    Cp = w2p.shape[1]
    assert Np % row_tile == 0 and Np % k_tile == 0

    bf16, f32 = jnp.bfloat16, jnp.float32
    vmem_limit = _vmem_limit_bytes()
    ti = Np // row_tile
    tk = Np // k_tile

    # ---- gc1 support: s1 = relu(x @ W1) -----------------------------------
    s1 = pl.pallas_call(
        support_kernel,
        out_shape=jax.ShapeDtypeStruct((Np, Hp), bf16),
        grid=(ti,),
        in_specs=[
            pl.BlockSpec((row_tile, Fp), lambda i: (i, 0)),   # x row tile
            pl.BlockSpec((Fp, Hp), lambda i: (0, 0)),         # W1 (resident)
        ],
        out_specs=pl.BlockSpec((row_tile, Hp), lambda i: (i, 0)),
        compiler_params=pltpu.CompilerParams(
            dimension_semantics=("parallel",),
            vmem_limit_bytes=vmem_limit),
        cost_estimate=pl.CostEstimate(
            flops=2 * Np * Fp * Hp, transcendentals=0,
            bytes_accessed=2 * (Np * Fp + Fp * Hp + Np * Hp)),
    )(xp, w1p)

    # ---- gc1 aggregation + outer relu + dropout(id) + gc2 support ----------
    s1_resident = (Np * Hp * 2) <= _RESIDENT_MAX_BYTES
    if s1_resident:
        s1_spec = pl.BlockSpec((Np, Hp), lambda i, k: (0, 0))   # DMA'd once
    else:
        s1_spec = pl.BlockSpec((k_tile, Hp), lambda i, k: (k, 0))

    s2 = pl.pallas_call(
        functools.partial(agg_support_kernel,
                          k_tile=k_tile, s_resident=s1_resident),
        out_shape=jax.ShapeDtypeStruct((Np, Cp), bf16),
        grid=(ti, tk),
        in_specs=[
            pl.BlockSpec((row_tile, k_tile), lambda i, k: (i, k)),  # adj tile
            s1_spec,                                                # s1
            pl.BlockSpec((1, Hp), lambda i, k: (0, 0)),             # b1
            pl.BlockSpec((Hp, Cp), lambda i, k: (0, 0)),            # W2
        ],
        out_specs=pl.BlockSpec((row_tile, Cp), lambda i, k: (i, 0)),
        scratch_shapes=[pltpu.VMEM((row_tile, Hp), jnp.float32)],
        compiler_params=pltpu.CompilerParams(
            dimension_semantics=("parallel", "arbitrary"),
            vmem_limit_bytes=vmem_limit),
        cost_estimate=pl.CostEstimate(
            flops=2 * Np * Np * Hp + 2 * Np * Hp * Cp, transcendentals=0,
            bytes_accessed=2 * (Np * Np + Np * Hp + Hp * Cp + Np * Cp) + 4 * Hp),
    )(adjp, s1, b1p, w2p)

    # ---- gc2 aggregation: y = adj @ s2 + b2 --------------------------------
    s2_resident = (Np * Cp * 2) <= _RESIDENT_MAX_BYTES
    if s2_resident:
        s2_spec = pl.BlockSpec((Np, Cp), lambda i, k: (0, 0))   # DMA'd once
    else:
        s2_spec = pl.BlockSpec((k_tile, Cp), lambda i, k: (k, 0))

    yp = pl.pallas_call(
        functools.partial(agg_kernel, k_tile=k_tile, s_resident=s2_resident),
        out_shape=jax.ShapeDtypeStruct((Np, Cp), f32),
        grid=(ti, tk),
        in_specs=[
            pl.BlockSpec((row_tile, k_tile), lambda i, k: (i, k)),  # adj tile
            s2_spec,                                                # s2
            pl.BlockSpec((1, Cp), lambda i, k: (0, 0)),             # b2
        ],
        out_specs=pl.BlockSpec((row_tile, Cp), lambda i, k: (i, 0)),
        scratch_shapes=[pltpu.VMEM((row_tile, Cp), jnp.float32)],
        compiler_params=pltpu.CompilerParams(
            dimension_semantics=("parallel", "arbitrary"),
            vmem_limit_bytes=vmem_limit),
        cost_estimate=pl.CostEstimate(
            flops=2 * Np * Np * Cp, transcendentals=0,
            bytes_accessed=2 * (Np * Np + Np * Cp) + 4 * (Cp + Np * Cp)),
    )(adjp, s2, b2p)

    # Slice away the padding (kernel stores are lane-dense; slice is XLA-side).
    return yp[:N, :C]


def gcn_forward(x, adj, w1, b1, w2, b2):
    """One-shot convenience (pads per call; prefer the hoisted pattern below)."""
    ops, meta = prepare_gcn_operands(x, adj, w1, b1, w2, b2)
    return gcn_forward_padded(ops["xp"], ops["adjp"], ops["w1p"], ops["b1p"],
                              ops["w2p"], ops["b2p"], **meta)


def init_gcn_params(key, nfeat, nhid, nclass):
    """Mirrors GraphConvolution.reset_parameters: U(-stdv, stdv), stdv = 1/sqrt(out)."""
    k1, k2, k3, k4 = jax.random.split(key, 4)
    stdv1 = 1.0 / math.sqrt(nhid)
    stdv2 = 1.0 / math.sqrt(nclass)
    w1 = jax.random.uniform(k1, (nfeat, nhid), jnp.float32, -stdv1, stdv1)
    b1 = jax.random.uniform(k2, (nhid,), jnp.float32, -stdv1, stdv1)
    w2 = jax.random.uniform(k3, (nhid, nclass), jnp.float32, -stdv2, stdv2)
    b2 = jax.random.uniform(k4, (nclass,), jnp.float32, -stdv2, stdv2)
    return w1, b1, w2, b2


if __name__ == "__main__":
    # Small Cora-like graph: 200 nodes, 48 input features, 32 hidden, 7 classes.
    # Padded internally to Np=256 (k_tile=256, row_tile=128 -> 2 row tiles).
    N, nfeat, nhid, nclass = 200, 48, 32, 7
    dropout_p = 0.5  # identity at inference

    key = jax.random.PRNGKey(0)
    kx, kadj, kparams = jax.random.split(key, 3)

    x = jax.random.normal(kx, (N, nfeat), jnp.float32)

    # Symmetric, row-normalized dense adjacency with self-loops.
    a = (jax.random.uniform(kadj, (N, N)) < 0.05).astype(jnp.float32)
    a = jnp.maximum(a, a.T) + jnp.eye(N, dtype=jnp.float32)
    adj = a / jnp.sum(a, axis=1, keepdims=True)

    w1, b1, w2, b2 = init_gcn_params(kparams, nfeat, nhid, nclass)

    # Hoisted pad/cast: done once per graph, outside the jitted forward.
    ops, meta = prepare_gcn_operands(x, adj, w1, b1, w2, b2)
    fwd = jax.jit(functools.partial(
        gcn_forward_padded,
        N=meta["N"], C=meta["C"],
        row_tile=meta["row_tile"], k_tile=meta["k_tile"]))

    out = fwd(ops["xp"], ops["adjp"], ops["w1p"], ops["b1p"],
              ops["w2p"], ops["b2p"])
    out = jax.block_until_ready(out)

    # Pure-JAX f32 reference (kernels compute in bf16 with f32 accumulation,
    # hence the relaxed tolerance).  Matches the given PyTorch spec:
    # support = relu(x @ W); out = adj @ support + b; outer relu + dropout(id).
    h = jnp.maximum(adj @ jnp.maximum(x @ w1, 0.0) + b1, 0.0)
    ref = adj @ jnp.maximum(h @ w2, 0.0) + b2

    assert out.shape == (N, nclass)
    assert jnp.allclose(out, ref, atol=3e-2, rtol=3e-2), float(
        jnp.max(jnp.abs(out - ref)))

    print("KERNEL_OK")
</pallas_src>

<mosaic_0001>
module attributes {stable_mosaic.version = 11 : i64} {
  func.func @agg_kernel(%arg0: i32, %arg1: i32, %arg2: memref<128x256xbf16, #tpu.memory_space<vmem>>, %arg3: memref<256x128xbf16, #tpu.memory_space<vmem>>, %arg4: memref<1x128xf32, #tpu.memory_space<vmem>>, %arg5: memref<128x128xf32, #tpu.memory_space<vmem>>, %arg6: memref<128x128xf32, #tpu.memory_space<vmem>>) attributes {dimension_semantics = [#tpu.dimension_semantics<parallel>, #tpu.dimension_semantics<arbitrary>], iteration_bounds = array<i64: 2, 1>, scalar_prefetch = 0 : i64, scratch_operands = 1 : i64, tpu.core_type = #tpu.core_type<tc>, window_params = [{transform_indices = @transform_0, window_bounds = array<i64: 128, 256>}, {pipeline_mode = #tpu.pipeline_mode<synchronous>, transform_indices = @transform_1, window_bounds = array<i64: 256, 128>}, {pipeline_mode = #tpu.pipeline_mode<synchronous>, transform_indices = @transform_2, window_bounds = array<i64: 1, 128>}, {transform_indices = @transform_3, window_bounds = array<i64: 128, 128>}]} {
    %c0_i32 = arith.constant 0 : i32
    %0 = arith.cmpi eq, %arg1, %c0_i32 : i32
    %1 = arith.extui %0 : i1 to i32
    %c0_i32_0 = arith.constant 0 : i32
    %2 = arith.cmpi ne, %1, %c0_i32_0 : i32
    scf.if %2 {
      %cst_9 = arith.constant 0.000000e+00 : f32
      %15 = vector.broadcast %cst_9 : f32 to vector<128x128xf32>
      %c0_10 = arith.constant 0 : index
      %c0_11 = arith.constant 0 : index
      %16 = vector.load %arg6[%c0_10, %c0_11] : memref<128x128xf32, #tpu.memory_space<vmem>>, vector<128x128xf32>
      tpu.vector_store %arg6[%c0_10, %c0_11], %15 {strides = array<i32>} : memref<128x128xf32, #tpu.memory_space<vmem>>, vector<128x128xf32>,
    } else {
    }
    %c256_i32 = arith.constant 256 : i32
    %3 = arith.muli %arg1, %c256_i32 : i32
    %4 = tpu.assume_multiple %3, 256 : i32
    %5 = arith.index_cast %4 : i32 to index
    %c0 = arith.constant 0 : index
    %6 = vector.load %arg3[%5, %c0] : memref<256x128xbf16, #tpu.memory_space<vmem>>, vector<256x128xbf16>
    %c0_1 = arith.constant 0 : index
    %c0_2 = arith.constant 0 : index
    %7 = vector.load %arg6[%c0_1, %c0_2] : memref<128x128xf32, #tpu.memory_space<vmem>>, vector<128x128xf32>
    %c0_3 = arith.constant 0 : index
    %c0_4 = arith.constant 0 : index
    %8 = vector.load %arg2[%c0_3, %c0_4] : memref<128x256xbf16, #tpu.memory_space<vmem>>, vector<128x256xbf16>
    %cst = arith.constant dense<0.000000e+00> : vector<128x128xf32>
    %9 = tpu.matmul %8, %6, %cst {dimension_numbers = #tpu.dot_dimension_numbers<[1], [0], [0], [1], [0, 0, 1, 1], [], []>} : vector<128x256xbf16>, vector<256x128xbf16>, vector<128x128xf32> -> vector<128x128xf32>
    %10 = arith.addf %7, %9 : vector<128x128xf32>
    %c0_5 = arith.constant 0 : index
    %c0_6 = arith.constant 0 : index
    %11 = vector.load %arg6[%c0_5, %c0_6] : memref<128x128xf32, #tpu.memory_space<vmem>>, vector<128x128xf32>
    tpu.vector_store %arg6[%c0_5, %c0_6], %10 {strides = array<i32>} : memref<128x128xf32, #tpu.memory_space<vmem>>, vector<128x128xf32>,
    %c0_i32_7 = arith.constant 0 : i32
    %12 = arith.cmpi eq, %arg1, %c0_i32_7 : i32
    %13 = arith.extui %12 : i1 to i32
    %c0_i32_8 = arith.constant 0 : i32
    %14 = arith.cmpi ne, %13, %c0_i32_8 : i32
    scf.if %14 {
      %c0_9 = arith.constant 0 : index
      %c0_10 = arith.constant 0 : index
      %15 = vector.load %arg6[%c0_9, %c0_10] : memref<128x128xf32, #tpu.memory_space<vmem>>, vector<128x128xf32>
      %c0_11 = arith.constant 0 : index
      %c0_12 = arith.constant 0 : index
      %16 = vector.load %arg4[%c0_11, %c0_12] : memref<1x128xf32, #tpu.memory_space<vmem>>, vector<1x128xf32>
      %17 = vector.broadcast %16 : vector<1x128xf32> to vector<128x128xf32>
      %18 = arith.addf %15, %17 : vector<128x128xf32>
      %c0_13 = arith.constant 0 : index
      %c0_14 = arith.constant 0 : index
      %19 = vector.load %arg5[%c0_13, %c0_14] : memref<128x128xf32, #tpu.memory_space<vmem>>, vector<128x128xf32>
      tpu.vector_store %arg5[%c0_13, %c0_14], %18 {strides = array<i32>} : memref<128x128xf32, #tpu.memory_space<vmem>>, vector<128x128xf32>,
    } else {
    }
    return
  }
  func.func @transform_0(%arg0: i32, %arg1: i32) -> (i32, i32) {
    %c0_i32 = arith.constant 0 : i32
    return %arg0, %arg1 : i32, i32
  }
  func.func @transform_1(%arg0: i32, %arg1: i32) -> (i32, i32) {
    %c0_i32 = arith.constant 0 : i32
    %c0_i32_0 = arith.constant 0 : i32
    %c0_i32_1 = arith.constant 0 : i32
    return %c0_i32, %c0_i32_0 : i32, i32
  }
  func.func @transform_2(%arg0: i32, %arg1: i32) -> (i32, i32) {
    %c0_i32 = arith.constant 0 : i32
    %c0_i32_0 = arith.constant 0 : i32
    %c0_i32_1 = arith.constant 0 : i32
    return %c0_i32, %c0_i32_0 : i32, i32
  }
  func.func @transform_3(%arg0: i32, %arg1: i32) -> (i32, i32) {
    %c0_i32 = arith.constant 0 : i32
    %c0_i32_0 = arith.constant 0 : i32
    return %arg0, %c0_i32 : i32, i32
  }
}

module attributes {stable_mosaic.version = 11 : i64} {
  func.func @agg_support_kernel(%arg0: i32, %arg1: i32, %arg2: memref<128x256xbf16, #tpu.memory_space<vmem>>, %arg3: memref<256x128xbf16, #tpu.memory_space<vmem>>, %arg4: memref<1x128xf32, #tpu.memory_space<vmem>>, %arg5: memref<128x128xbf16, #tpu.memory_space<vmem>>, %arg6: memref<128x128xbf16, #tpu.memory_space<vmem>>, %arg7: memref<128x128xf32, #tpu.memory_space<vmem>>) attributes {dimension_semantics = [#tpu.dimension_semantics<parallel>, #tpu.dimension_semantics<arbitrary>], iteration_bounds = array<i64: 2, 1>, scalar_prefetch = 0 : i64, scratch_operands = 1 : i64, tpu.core_type = #tpu.core_type<tc>, window_params = [{transform_indices = @transform_0, window_bounds = array<i64: 128, 256>}, {pipeline_mode = #tpu.pipeline_mode<synchronous>, transform_indices = @transform_1, window_bounds = array<i64: 256, 128>}, {pipeline_mode = #tpu.pipeline_mode<synchronous>, transform_indices = @transform_2, window_bounds = array<i64: 1, 128>}, {pipeline_mode = #tpu.pipeline_mode<synchronous>, transform_indices = @transform_3, window_bounds = array<i64: 128, 128>}, {transform_indices = @transform_4, window_bounds = array<i64: 128, 128>}]} {
    %c0_i32 = arith.constant 0 : i32
    %0 = arith.cmpi eq, %arg1, %c0_i32 : i32
    %1 = arith.extui %0 : i1 to i32
    %c0_i32_0 = arith.constant 0 : i32
    %2 = arith.cmpi ne, %1, %c0_i32_0 : i32
    scf.if %2 {
      %cst_9 = arith.constant 0.000000e+00 : f32
      %15 = vector.broadcast %cst_9 : f32 to vector<128x128xf32>
      %c0_10 = arith.constant 0 : index
      %c0_11 = arith.constant 0 : index
      %16 = vector.load %arg7[%c0_10, %c0_11] : memref<128x128xf32, #tpu.memory_space<vmem>>, vector<128x128xf32>
      tpu.vector_store %arg7[%c0_10, %c0_11], %15 {strides = array<i32>} : memref<128x128xf32, #tpu.memory_space<vmem>>, vector<128x128xf32>,
    } else {
    }
    %c256_i32 = arith.constant 256 : i32
    %3 = arith.muli %arg1, %c256_i32 : i32
    %4 = tpu.assume_multiple %3, 256 : i32
    %5 = arith.index_cast %4 : i32 to index
    %c0 = arith.constant 0 : index
    %6 = vector.load %arg3[%5, %c0] : memref<256x128xbf16, #tpu.memory_space<vmem>>, vector<256x128xbf16>
    %c0_1 = arith.constant 0 : index
    %c0_2 = arith.constant 0 : index
    %7 = vector.load %arg7[%c0_1, %c0_2] : memref<128x128xf32, #tpu.memory_space<vmem>>, vector<128x128xf32>
    %c0_3 = arith.constant 0 : index
    %c0_4 = arith.constant 0 : index
    %8 = vector.load %arg2[%c0_3, %c0_4] : memref<128x256xbf16, #tpu.memory_space<vmem>>, vector<128x256xbf16>
    %cst = arith.constant dense<0.000000e+00> : vector<128x128xf32>
    %9 = tpu.matmul %8, %6, %cst {dimension_numbers = #tpu.dot_dimension_numbers<[1], [0], [0], [1], [0, 0, 1, 1], [], []>} : vector<128x256xbf16>, vector<256x128xbf16>, vector<128x128xf32> -> vector<128x128xf32>
    %10 = arith.addf %7, %9 : vector<128x128xf32>
    %c0_5 = arith.constant 0 : index
    %c0_6 = arith.constant 0 : index
    %11 = vector.load %arg7[%c0_5, %c0_6] : memref<128x128xf32, #tpu.memory_space<vmem>>, vector<128x128xf32>
    tpu.vector_store %arg7[%c0_5, %c0_6], %10 {strides = array<i32>} : memref<128x128xf32, #tpu.memory_space<vmem>>, vector<128x128xf32>,
    %c0_i32_7 = arith.constant 0 : i32
    %12 = arith.cmpi eq, %arg1, %c0_i32_7 : i32
    %13 = arith.extui %12 : i1 to i32
    %c0_i32_8 = arith.constant 0 : i32
    %14 = arith.cmpi ne, %13, %c0_i32_8 : i32
    scf.if %14 {
      %c0_9 = arith.constant 0 : index
      %c0_10 = arith.constant 0 : index
      %15 = vector.load %arg7[%c0_9, %c0_10] : memref<128x128xf32, #tpu.memory_space<vmem>>, vector<128x128xf32>
      %c0_11 = arith.constant 0 : index
      %c0_12 = arith.constant 0 : index
      %16 = vector.load %arg4[%c0_11, %c0_12] : memref<1x128xf32, #tpu.memory_space<vmem>>, vector<1x128xf32>
      %17 = vector.broadcast %16 : vector<1x128xf32> to vector<128x128xf32>
      %18 = arith.addf %15, %17 : vector<128x128xf32>
      %cst_13 = arith.constant 0.000000e+00 : f32
      %19 = vector.broadcast %cst_13 : f32 to vector<128x128xf32>
      %20 = arith.maximumf %18, %19 : vector<128x128xf32>
      %21 = arith.truncf %20 : vector<128x128xf32> to vector<128x128xbf16>
      %c0_14 = arith.constant 0 : index
      %c0_15 = arith.constant 0 : index
      %22 = vector.load %arg5[%c0_14, %c0_15] : memref<128x128xbf16, #tpu.memory_space<vmem>>, vector<128x128xbf16>
      %cst_16 = arith.constant dense<0.000000e+00> : vector<128x128xf32>
      %23 = tpu.matmul %21, %22, %cst_16 {dimension_numbers = #tpu.dot_dimension_numbers<[1], [0], [0], [1], [0, 0, 1, 1], [], []>} : vector<128x128xbf16>, vector<128x128xbf16>, vector<128x128xf32> -> vector<128x128xf32>
      %cst_17 = arith.constant 0.000000e+00 : f32
      %24 = vector.broadcast %cst_17 : f32 to vector<128x128xf32>
      %25 = arith.maximumf %23, %24 : vector<128x128xf32>
      %26 = arith.truncf %25 : vector<128x128xf32> to vector<128x128xbf16>
      %c0_18 = arith.constant 0 : index
      %c0_19 = arith.constant 0 : index
      %27 = vector.load %arg6[%c0_18, %c0_19] : memref<128x128xbf16, #tpu.memory_space<vmem>>, vector<128x128xbf16>
      tpu.vector_store %arg6[%c0_18, %c0_19], %26 {strides = array<i32>} : memref<128x128xbf16, #tpu.memory_space<vmem>>, vector<128x128xbf16>,
    } else {
    }
    return
  }
  func.func @transform_0(%arg0: i32, %arg1: i32) -> (i32, i32) {
    %c0_i32 = arith.constant 0 : i32
    return %arg0, %arg1 : i32, i32
  }
  func.func @transform_1(%arg0: i32, %arg1: i32) -> (i32, i32) {
    %c0_i32 = arith.constant 0 : i32
    %c0_i32_0 = arith.constant 0 : i32
    %c0_i32_1 = arith.constant 0 : i32
    return %c0_i32, %c0_i32_0 : i32, i32
  }
  func.func @transform_2(%arg0: i32, %arg1: i32) -> (i32, i32) {
    %c0_i32 = arith.constant 0 : i32
    %c0_i32_0 = arith.constant 0 : i32
    %c0_i32_1 = arith.constant 0 : i32
    return %c0_i32, %c0_i32_0 : i32, i32
  }
  func.func @transform_3(%arg0: i32, %arg1: i32) -> (i32, i32) {
    %c0_i32 = arith.constant 0 : i32
    %c0_i32_0 = arith.constant 0 : i32
    %c0_i32_1 = arith.constant 0 : i32
    return %c0_i32, %c0_i32_0 : i32, i32
  }
  func.func @transform_4(%arg0: i32, %arg1: i32) -> (i32, i32) {
    %c0_i32 = arith.constant 0 : i32
    %c0_i32_0 = arith.constant 0 : i32
    return %arg0, %c0_i32 : i32, i32
  }
}

module attributes {stable_mosaic.version = 11 : i64} {
  func.func @support_kernel(%arg0: i32, %arg1: memref<128x128xbf16, #tpu.memory_space<vmem>>, %arg2: memref<128x128xbf16, #tpu.memory_space<vmem>>, %arg3: memref<128x128xbf16, #tpu.memory_space<vmem>>) attributes {dimension_semantics = [#tpu.dimension_semantics<parallel>], iteration_bounds = array<i64: 2>, scalar_prefetch = 0 : i64, scratch_operands = 0 : i64, tpu.core_type = #tpu.core_type<tc>, window_params = [{transform_indices = @transform_0, window_bounds = array<i64: 128, 128>}, {pipeline_mode = #tpu.pipeline_mode<synchronous>, transform_indices = @transform_1, window_bounds = array<i64: 128, 128>}, {transform_indices = @transform_2, window_bounds = array<i64: 128, 128>}]} {
    %c0 = arith.constant 0 : index
    %c0_0 = arith.constant 0 : index
    %0 = vector.load %arg1[%c0, %c0_0] : memref<128x128xbf16, #tpu.memory_space<vmem>>, vector<128x128xbf16>
    %c0_1 = arith.constant 0 : index
    %c0_2 = arith.constant 0 : index
    %1 = vector.load %arg2[%c0_1, %c0_2] : memref<128x128xbf16, #tpu.memory_space<vmem>>, vector<128x128xbf16>
    %cst = arith.constant dense<0.000000e+00> : vector<128x128xf32>
    %2 = tpu.matmul %0, %1, %cst {dimension_numbers = #tpu.dot_dimension_numbers<[1], [0], [0], [1], [0, 0, 1, 1], [], []>} : vector<128x128xbf16>, vector<128x128xbf16>, vector<128x128xf32> -> vector<128x128xf32>
    %cst_3 = arith.constant 0.000000e+00 : f32
    %3 = vector.broadcast %cst_3 : f32 to vector<128x128xf32>
    %4 = arith.maximumf %2, %3 : vector<128x128xf32>
    %5 = arith.truncf %4 : vector<128x128xf32> to vector<128x128xbf16>
    %c0_4 = arith.constant 0 : index
    %c0_5 = arith.constant 0 : index
    %6 = vector.load %arg3[%c0_4, %c0_5] : memref<128x128xbf16, #tpu.memory_space<vmem>>, vector<128x128xbf16>
    tpu.vector_store %arg3[%c0_4, %c0_5], %5 {strides = array<i32>} : memref<128x128xbf16, #tpu.memory_space<vmem>>, vector<128x128xbf16>,
    return
  }
  func.func @transform_0(%arg0: i32) -> (i32, i32) {
    %c0_i32 = arith.constant 0 : i32
    %c0_i32_0 = arith.constant 0 : i32
    return %arg0, %c0_i32 : i32, i32
  }
  func.func @transform_1(%arg0: i32) -> (i32, i32) {
    %c0_i32 = arith.constant 0 : i32
    %c0_i32_0 = arith.constant 0 : i32
    %c0_i32_1 = arith.constant 0 : i32
    return %c0_i32, %c0_i32_0 : i32, i32
  }
  func.func @transform_2(%arg0: i32) -> (i32, i32) {
    %c0_i32 = arith.constant 0 : i32
    %c0_i32_0 = arith.constant 0 : i32
    return %arg0, %c0_i32 : i32, i32
  }
}

</mosaic_0001>

<bundles_post_ra>
// kernel: gcn_forward_padded.5
= control target key start
LH: loop header
LB: loop body
LE: loop exit
PB: predicated region body
PF: predicated region fallthrough
CT: control target
= control target key end

     0   :  { %s986_s12 = smov 0   ;;  %s988_s13 = smov 0   ;;  %s1150_s0 = inlined_call_operand.vmem [shape: bf16[256,256], index: 0, kind: input, shape index: {}]   ;;  %s1151_s1 = inlined_call_operand.vmem [shape: bf16[256,128], index: 1, kind: input, shape index: {}]   ;;  %s1152_s2 = inlined_call_operand.vmem [shape: f32[1,128], index: 2, kind: input, shape index: {}]   ;;  %s1153_s3 = inlined_call_operand.vmem [shape: f32[256,128], index: 3, kind: output, shape index: {}]  }
   0x1   :  { %s990_s14 = smov 0  }
   0x2 LB: > { %s25_s15 = sadd.s32 1, %s960_s13  ;;  %p732_p0 = scmp.ge.s32.totalorder %s964_s14, 1  ;;  %s964_s14 = sphi %s990_s14, %s13_s14   ;;  %s960_s13 = sphi %s988_s13, %s1155_s13   ;;  %s956_s12 = sphi %s986_s12, %s1154_s12  }
   0x3   : > { %p27_p1 = scmp.ge.s32.totalorder %s25_s15, 2  ;;  %p158_p2 = scmp.lt.s32.totalorder %s964_s14, 3 }
   0x5   : > { %s1157_s15 = smov (%p27_p1, %s25_s15), 0  ;;  %p159_p3 = pnand %p732_p0, %p158_p2 }
   0x6   : > { %s733_s28 = sshll.u32 (!%p159_p3), %s956_s12, 4 }
   0x7   : > { %162 = sbr.rel (%p159_p3) target bundleno = 238 (0xee), region = 32  ;;  %p189_p4 = scmp.lt.s32.totalorder (!%p159_p3), %s733_s28, 31 }
   0xc   : > { %v876_v0 = vld [vmem:[%s1151_s1 + $0x38] sm:$0xff]  ;;  %v875_v2 = vld [vmem:[%s1151_s1 + $0x30] sm:$0xff]  ;;  %v874_v4 = vld [vmem:[%s1151_s1 + $0x28] sm:$0xff]  ;;  %s1159_s28 = smov (!%p189_p4, %s733_s28), 31 }
   0xd   : > { %v884_v1 = vld [vmem:[%s1151_s1 + $0x78] sm:$0xff]  ;;  %470 = vmatpush.bf16.msra.mxu0 %v876_v0  ;;  %901 = vmatpush.bf16.msra.mxu2 %v876_v0  ;;  %v883_v3 = vld [vmem:[%s1151_s1 + $0x70] sm:$0xff]  ;;  %v882_v5 = vld [vmem:[%s1151_s1 + $0x68] sm:$0xff]  ;;  %s868_s17 = sshll.u32 %s1159_s28, 3 }
   0xe   : > { %519 = vmatpush.bf16.msra.mxu1 %v884_v1  ;;  %909 = vmatpush.bf16.msra.mxu3 %v884_v1  ;;  %v873_v6 = vld [vmem:[%s1151_s1 + $0x20] sm:$0xff]  ;;  %v872_v8 = vld [vmem:[%s1151_s1 + $0x18] sm:$0xff]  ;;  %v871_v10 = vld [vmem:[%s1151_s1 + $0x10] sm:$0xff]  ;;  %s1054_s22 = scalar_lea.vmem %s1150_s0, %s868_s17  ;;  %s1107_s7 = scalar_lea.vmem %s1153_s3, %s868_s17 }
   0xf   : > { %v881_v7 = vld [vmem:[%s1151_s1 + $0x60] sm:$0xff]  ;;  %v880_v9 = vld [vmem:[%s1151_s1 + $0x58] sm:$0xff]  ;;  %v879_v11 = vld [vmem:[%s1151_s1 + $0x50] sm:$0xff] }
  0x10   : > { %v870_v12 = vld [vmem:[%s1151_s1 + $0x8] sm:$0xff]  ;;  %v869_v14 = vld [vmem:[%s1151_s1] sm:$0xff]  ;;  %v748_v28 = vld [vmem:[%s1054_s22 + $0x10] sm:$0xf] }
  0x11   : > { %471 = vmatpush.bf16.msra.mxu0 %v875_v2  ;;  %902 = vmatpush.bf16.msra.mxu2 %v875_v2  ;;  %v878_v13 = vld [vmem:[%s1151_s1 + $0x48] sm:$0xff]  ;;  %v877_v15 = vld [vmem:[%s1151_s1 + $0x40] sm:$0xff]  ;;  %v888_v29 = vld [vmem:[%s1054_s22 + $0x14] sm:$0xf0] }
  0x12   : > { %520 = vmatpush.bf16.msra.mxu1 %v883_v3  ;;  %910 = vmatpush.bf16.msra.mxu3 %v883_v3  ;;  %v740_v16 = vld [vmem:[%s1054_s22] sm:$0xf]  ;;  %v886_v17 = vld [vmem:[%s1054_s22 + $0x4] sm:$0xf0]  ;;  %v885_v20 = vld [vmem:[%s1054_s22 + $0x4] sm:$0xf]  ;;  %v749_v36 = vor.u32 %v888_v29, %v748_v28 }
  0x13   : > { %v772_v18 = vld [vmem:[%s1054_s22 + $0x40] sm:$0xf]  ;;  %v894_v19 = vld [vmem:[%s1054_s22 + $0x44] sm:$0xf0]  ;;  %v742_v21 = vld [vmem:[%s1054_s22 + $0x8] sm:$0xf0]  ;;  %v741_v24 = vor.u32 %v886_v17, %v740_v16 }
  0x14   : > { %v893_v22 = vld [vmem:[%s1054_s22 + $0x44] sm:$0xf]  ;;  %v774_v23 = vld [vmem:[%s1054_s22 + $0x48] sm:$0xf0]  ;;  %v773_v25 = vor.u32 %v894_v19, %v772_v18  ;;  %v745_v26 = vor.u32 %v885_v20, %v742_v21  ;;  %v780_v30 = vld [vmem:[%s1054_s22 + $0x50] sm:$0xf] }
  0x15   : > { %472 = vmatpush.bf16.msra.mxu0 %v874_v4  ;;  %903 = vmatpush.bf16.msra.mxu2 %v874_v4  ;;  %v777_v27 = vor.u32 %v893_v22, %v774_v23  ;;  %v896_v31 = vld [vmem:[%s1054_s22 + $0x54] sm:$0xf0]  ;;  %v887_v32 = vld [vmem:[%s1054_s22 + $0x14] sm:$0xf]  ;;  %v750_v33 = vld [vmem:[%s1054_s22 + $0x18] sm:$0xf0] }
  0x16   : > { %521 = vmatpush.bf16.msra.mxu1 %v882_v5  ;;  %911 = vmatpush.bf16.msra.mxu3 %v882_v5  ;;  %v895_v34 = vld [vmem:[%s1054_s22 + $0x54] sm:$0xf]  ;;  %v782_v35 = vld [vmem:[%s1054_s22 + $0x58] sm:$0xf0]  ;;  %v781_v37 = vor.u32 %v896_v31, %v780_v30  ;;  %v753_v38 = vor.u32 %v887_v32, %v750_v33  ;;  %v756_v40 = vld [vmem:[%s1054_s22 + $0x20] sm:$0xf] }
  0x17   : > { %v785_v39 = vor.u32 %v895_v34, %v782_v35  ;;  %v890_v41 = vld [vmem:[%s1054_s22 + $0x24] sm:$0xf0]  ;;  %v788_v42 = vld [vmem:[%s1054_s22 + $0x60] sm:$0xf]  ;;  %v889_v44 = vld [vmem:[%s1054_s22 + $0x24] sm:$0xf] }
  0x18   : > { %v898_v43 = vld [vmem:[%s1054_s22 + $0x64] sm:$0xf0]  ;;  %v758_v45 = vld [vmem:[%s1054_s22 + $0x28] sm:$0xf0]  ;;  %v897_v46 = vld [vmem:[%s1054_s22 + $0x64] sm:$0xf]  ;;  %v757_v48 = vor.u32 %v890_v41, %v756_v40 }
  0x19   : > { %473 = vmatpush.bf16.msra.mxu0 %v873_v6  ;;  %904 = vmatpush.bf16.msra.mxu2 %v873_v6  ;;  %v790_v47 = vld [vmem:[%s1054_s22 + $0x68] sm:$0xf0]  ;;  %v789_v49 = vor.u32 %v898_v43, %v788_v42  ;;  %v761_v50 = vor.u32 %v889_v44, %v758_v45  ;;  %v764_v52 = vld [vmem:[%s1054_s22 + $0x30] sm:$0xf]  ;;  %v892_v53 = vld [vmem:[%s1054_s22 + $0x34] sm:$0xf0] }
  0x1a   : > { %522 = vmatpush.bf16.msra.mxu1 %v881_v7  ;;  %912 = vmatpush.bf16.msra.mxu3 %v881_v7  ;;  %v793_v51 = vor.u32 %v897_v46, %v790_v47  ;;  %v796_v54 = vld [vmem:[%s1054_s22 + $0x70] sm:$0xf]  ;;  %v900_v55 = vld [vmem:[%s1054_s22 + $0x74] sm:$0xf0]  ;;  %v891_v56 = vld [vmem:[%s1054_s22 + $0x34] sm:$0xf]  ;;  %v765_v60 = vor.u32 %v892_v53, %v764_v52 }
  0x1b   : > { %v766_v57 = vld [vmem:[%s1054_s22 + $0x38] sm:$0xf0]  ;;  %v899_v58 = vld [vmem:[%s1054_s22 + $0x74] sm:$0xf]  ;;  %v797_v61 = vor.u32 %v900_v55, %v796_v54  ;;  %v1100_v1 = vld [vmem:[%s1152_s2] ss:$0 sm:$0xff] }
  0x1c   : > { %v798_v59 = vld [vmem:[%s1054_s22 + $0x78] sm:$0xf0]  ;;  %v769_v62 = vor.u32 %v891_v56, %v766_v57 }
  0x1d   : > { %474 = vmatpush.bf16.msra.mxu0 %v872_v8  ;;  %905 = vmatpush.bf16.msra.mxu2 %v872_v8  ;;  %v801_v63 = vor.u32 %v899_v58, %v798_v59 }
  0x1e   : > { %523 = vmatpush.bf16.msra.mxu1 %v880_v9  ;;  %913 = vmatpush.bf16.msra.mxu3 %v880_v9 }
  0x21   : > { %475 = vmatpush.bf16.msra.mxu0 %v871_v10  ;;  %906 = vmatpush.bf16.msra.mxu2 %v871_v10 }
  0x22   : > { %524 = vmatpush.bf16.msra.mxu1 %v879_v11  ;;  %914 = vmatpush.bf16.msra.mxu3 %v879_v11 }
  0x25   : > { %476 = vmatpush.bf16.msra.mxu0 %v870_v12  ;;  %907 = vmatpush.bf16.msra.mxu2 %v870_v12 }
  0x26   : > { %525 = vmatpush.bf16.msra.mxu1 %v878_v13  ;;  %915 = vmatpush.bf16.msra.mxu3 %v878_v13 }
  0x29   : > { %477 = vmatpush.bf16.msra.mxu0 %v869_v14  ;;  %908 = vmatpush.bf16.msra.mxu2 %v869_v14 }
  0x2a   : > { %526 = vmatpush.bf16.msra.mxu1 %v877_v15  ;;  %916 = vmatpush.bf16.msra.mxu3 %v877_v15 }
  0x2c   : > { %478 = vmatmul.bf16.vlgmr.msra.gmra.mxu0 %v741_v24  ;;  %498 = vmatmul.bf16.vlgmr.msra.gmra.mxu2 %v773_v25 }
  0x2d   : > { %527 = vmatmul.bf16.vlgmr.msra.gmra.mxu1 %v745_v26  ;;  %547 = vmatmul.bf16.vlgmr.msra.gmra.mxu3 %v777_v27 }
  0x3c   : > { %483 = vmatmul.bf16.gmra.mxu0 %v749_v36  ;;  %503 = vmatmul.bf16.gmra.mxu2 %v781_v37 }
  0x3d   : > { %532 = vmatmul.bf16.gmra.mxu1 %v753_v38  ;;  %552 = vmatmul.bf16.gmra.mxu3 %v785_v39 }
  0x4c   : > { %488 = vmatmul.bf16.gmra.mxu0 %v757_v48  ;;  %508 = vmatmul.bf16.gmra.mxu2 %v789_v49 }
  0x4d   : > { %537 = vmatmul.bf16.gmra.mxu1 %v761_v50  ;;  %557 = vmatmul.bf16.gmra.mxu3 %v793_v51 }
  0x5c   : > { %493 = vmatmul.bf16.gmra.mxu0 %v765_v60  ;;  %513 = vmatmul.bf16.gmra.mxu2 %v797_v61 }
  0x5d   : > { %542 = vmatmul.bf16.gmra.mxu1 %v769_v62  ;;  %562 = vmatmul.bf16.gmra.mxu3 %v801_v63 }
  0xa9   : > { %v479_v0 = vpop.f32.mrf.mxu0 }
  0xaa   : > { %v528_v2 = vpop.f32.mrf.mxu1 }
  0xab   : > { %v529_v3 = vadd.f32 %v528_v2, %v479_v0 }
  0xad   : > { %v623_v4 = vadd.f32 %v1100_v1, %v529_v3 }
  0xaf   : > { %639 = vst [vmem:[%s1107_s7] sm:$0xff] %v623_v4  ;;  %v499_v5 = vpop.f32.mrf.mxu2 }
  0xb0   : > { %v548_v6 = vpop.f32.mrf.mxu3 }
  0xb1   : > { %v549_v7 = vadd.f32 %v548_v6, %v499_v5  ;;  %v481_v8 = vpop.f32.mrf.mxu0 }
  0xb2   : > { %v530_v9 = vpop.f32.mrf.mxu1 }
  0xb3   : > { %v631_v10 = vadd.f32 %v1100_v1, %v549_v7  ;;  %v531_v11 = vadd.f32 %v530_v9, %v481_v8 }
  0xb5   : > { %647 = vst [vmem:[%s1107_s7 + $0x40] sm:$0xff] %v631_v10  ;;  %v624_v12 = vadd.f32 %v1100_v1, %v531_v11 }
  0xb7   : > { %640 = vst [vmem:[%s1107_s7 + $0x8] sm:$0xff] %v624_v12  ;;  %v501_v13 = vpop.f32.mrf.mxu2 }
  0xb8   : > { %v550_v14 = vpop.f32.mrf.mxu3 }
  0xb9   : > { %v551_v15 = vadd.f32 %v550_v14, %v501_v13  ;;  %v484_v16 = vpop.f32.mrf.mxu0 }
  0xba   : > { %v533_v17 = vpop.f32.mrf.mxu1 }
  0xbb   : > { %v632_v18 = vadd.f32 %v1100_v1, %v551_v15  ;;  %v534_v19 = vadd.f32 %v533_v17, %v484_v16 }
  0xbd   : > { %648 = vst [vmem:[%s1107_s7 + $0x48] sm:$0xff] %v632_v18  ;;  %v625_v20 = vadd.f32 %v1100_v1, %v534_v19 }
  0xbf   : > { %641 = vst [vmem:[%s1107_s7 + $0x10] sm:$0xff] %v625_v20  ;;  %v504_v21 = vpop.f32.mrf.mxu2 }
  0xc0   : > { %v553_v22 = vpop.f32.mrf.mxu3 }
  0xc1   : > { %v554_v23 = vadd.f32 %v553_v22, %v504_v21  ;;  %v486_v24 = vpop.f32.mrf.mxu0 }
  0xc2   : > { %v535_v25 = vpop.f32.mrf.mxu1 }
  0xc3   : > { %v633_v26 = vadd.f32 %v1100_v1, %v554_v23  ;;  %v536_v27 = vadd.f32 %v535_v25, %v486_v24 }
  0xc5   : > { %649 = vst [vmem:[%s1107_s7 + $0x50] sm:$0xff] %v633_v26  ;;  %v626_v28 = vadd.f32 %v1100_v1, %v536_v27 }
  0xc7   : > { %642 = vst [vmem:[%s1107_s7 + $0x18] sm:$0xff] %v626_v28  ;;  %v506_v29 = vpop.f32.mrf.mxu2 }
  0xc8   : > { %v555_v30 = vpop.f32.mrf.mxu3 }
  0xc9   : > { %v556_v31 = vadd.f32 %v555_v30, %v506_v29  ;;  %v489_v32 = vpop.f32.mrf.mxu0 }
  0xca   : > { %v538_v33 = vpop.f32.mrf.mxu1 }
  0xcb   : > { %v634_v34 = vadd.f32 %v1100_v1, %v556_v31  ;;  %v539_v35 = vadd.f32 %v538_v33, %v489_v32 }
  0xcd   : > { %650 = vst [vmem:[%s1107_s7 + $0x58] sm:$0xff] %v634_v34  ;;  %v627_v36 = vadd.f32 %v1100_v1, %v539_v35 }
  0xcf   : > { %643 = vst [vmem:[%s1107_s7 + $0x20] sm:$0xff] %v627_v36  ;;  %v509_v37 = vpop.f32.mrf.mxu2 }
  0xd0   : > { %v558_v38 = vpop.f32.mrf.mxu3 }
  0xd1   : > { %v559_v39 = vadd.f32 %v558_v38, %v509_v37  ;;  %v491_v40 = vpop.f32.mrf.mxu0 }
  0xd2   : > { %v540_v41 = vpop.f32.mrf.mxu1 }
  0xd3   : > { %v635_v42 = vadd.f32 %v1100_v1, %v559_v39  ;;  %v541_v43 = vadd.f32 %v540_v41, %v491_v40 }
  0xd5   : > { %651 = vst [vmem:[%s1107_s7 + $0x60] sm:$0xff] %v635_v42  ;;  %v628_v44 = vadd.f32 %v1100_v1, %v541_v43 }
  0xd7   : > { %644 = vst [vmem:[%s1107_s7 + $0x28] sm:$0xff] %v628_v44  ;;  %v511_v45 = vpop.f32.mrf.mxu2 }
  0xd8   : > { %v560_v46 = vpop.f32.mrf.mxu3 }
  0xd9   : > { %v561_v47 = vadd.f32 %v560_v46, %v511_v45  ;;  %v494_v48 = vpop.f32.mrf.mxu0 }
  0xda   : > { %v543_v49 = vpop.f32.mrf.mxu1 }
  0xdb   : > { %v636_v50 = vadd.f32 %v1100_v1, %v561_v47  ;;  %v544_v51 = vadd.f32 %v543_v49, %v494_v48 }
  0xdd   : > { %652 = vst [vmem:[%s1107_s7 + $0x68] sm:$0xff] %v636_v50  ;;  %v629_v52 = vadd.f32 %v1100_v1, %v544_v51 }
  0xdf   : > { %645 = vst [vmem:[%s1107_s7 + $0x30] sm:$0xff] %v629_v52  ;;  %v514_v53 = vpop.f32.mrf.mxu2 }
  0xe0   : > { %v563_v54 = vpop.f32.mrf.mxu3 }
  0xe1   : > { %v564_v55 = vadd.f32 %v563_v54, %v514_v53  ;;  %v496_v56 = vpop.f32.mrf.mxu0 }
  0xe2   : > { %v545_v57 = vpop.f32.mrf.mxu1 }
  0xe3   : > { %v637_v58 = vadd.f32 %v1100_v1, %v564_v55  ;;  %v546_v59 = vadd.f32 %v545_v57, %v496_v56 }
  0xe5   : > { %653 = vst [vmem:[%s1107_s7 + $0x70] sm:$0xff] %v637_v58  ;;  %v630_v60 = vadd.f32 %v1100_v1, %v546_v59 }
  0xe7   : > { %646 = vst [vmem:[%s1107_s7 + $0x38] sm:$0xff] %v630_v60  ;;  %v516_v61 = vpop.f32.mrf.mxu2 }
  0xe8   : > { %v565_v62 = vpop.f32.mrf.mxu3 }
  0xe9   : > { %v566_v63 = vadd.f32 %v565_v62, %v516_v61 }
  0xeb   : > { %v638_v0 = vadd.f32 %v1100_v1, %v566_v63 }
  0xed   : > { %654 = vst [vmem:[%s1107_s7 + $0x78] sm:$0xff] %v638_v0 }
  0xee PF: > { %s13_s14 = sadd.s32 1, %s964_s14   ;;  %s1154_s12 = smov %s960_s13 }
  0xef   : > { %p10_p5 = scmp.ge.s32.totalorder %s13_s14, 4   ;;  %s1155_s13 = smov %s1157_s15 }
  0xf1   :  { %12 = sbr.rel (!%p10_p5) target bundleno = 2 (0x2), region = 71 }

// kernel: gcn_forward_padded.3
= control target key start
LH: loop header
LB: loop body
LE: loop exit
PB: predicated region body
PF: predicated region fallthrough
CT: control target
= control target key end

     0   :  { %7 = vsyncpa [#allocation3], 0  ;;  %s956_s0 = inlined_call_operand.hbm [shape: bf16[256,128], index: 0, kind: input, shape index: {}]   ;;  %s957_s1 = inlined_call_operand.hbm [shape: bf16[128,128], index: 1, kind: input, shape index: {}]   ;;  %s958_s2 = inlined_call_operand.vmem [shape: bf16[256,128], index: 2, kind: output, shape index: {}]  }
   0x1   :  { %9 = vsyncpa [#allocation3 + $0x1], 0 }
   0x2   :  { %10 = vsyncpa [#allocation5], 0  ;;  %s824_s9 = smov 0   ;;  %s826_s10 = smov 0  }
   0x3   :  { %s828_s11 = smov 0   ;;  %s830_s12 = smov 0  }
   0x4 LB: > { %s487_s13 = sadd.s32 4294967295, %s804_s12   ;;  %p36_p0 = scmp.ne.s32.totalorder %s796_s10, %s792_s9  ;;  %s804_s12 = sphi %s830_s12, %s966_s12   ;;  %s800_s11 = sphi %s828_s11, %s965_s11   ;;  %s796_s10 = sphi %s826_s10, %s964_s10   ;;  %s792_s9 = sphi %s824_s9, %s963_s9  }
   0x5   : > { %p846_p1 = scmp.eq.s32.totalorder %s487_s13, 0  ;;  %p489_p2 = scmp.ge.s32.totalorder %s804_s12, 1 }
   0x6   : > { %p94_p3 = scmp.lt.s32.totalorder %s804_s12, 3  ;;  %s105_s18 = sshll.u32 %s957_s1, 4  ;;  %s106_s18 = int_to_ptr.hbm [resolvable:$true] %s105_s18 }
   0x7   : > { %p854_p4 = por %p846_p1, %p36_p0  ;;  %s806_s20 = smov [#allocation4]  }
   0x8   : > { %p861_p5 = pnand %p489_p2, %p94_p3  ;;  %s107_s21 = sshll.u32 %s806_s20, 4  ;;  %s108_s21 = int_to_ptr.vmem [resolvable:$true] %s107_s21 }
   0x9   : > { %s870_s22 = sadd.s32 1, %s804_s12   ;;  %s807_s23 = smov 64  }
   0xa   : > { %p660_p6 = pneg %p861_p5  ;;  %s808_s24 = smov 4  }
   0xb   : > { %s20_s25 = ssub.s32 %s804_s12, %s870_s22  ;;  %s23_s26 = sadd.s32 1, %s800_s11 }
   0xc   : > { %p661_p7 = pnand %p660_p6, %p846_p1  ;;  %p21_p8 = scmp.eq.s32.totalorder %s20_s25, 0 }
   0xd   : > { %p30_p9 = scmp.ne.s32.totalorder %s800_s11, %s796_s10  ;;  %p31_p10 = scmp.eq.s32.totalorder %s804_s12, 0 }
   0xe   : > { %663 = dma.hbm_to_vmem [thread:$0]  (!%p661_p7), %s106_s18, 1024, %s108_s21, [#allocation5], %s807_s23, %s807_s23, %s808_s24  }
   0xf   : > { %p669_p11 = scmp.lt.s32.totalorder %s804_s12, 2  ;;  %p32_p12 = por %p31_p10, %p30_p9 }
  0x10   : > { %s883_s27 = scalar_select %p21_p8, %s800_s11, %s23_s26  }
  0x11   : > { %s121_s28 = sand.u32 1, %s800_s11   ;;  %s566_s30 = sshll.u32 %s804_s12, 6 }
  0x12   : > { %s492_s29 = sshll.u32 %s121_s28, 6  ;;  %s130_s5 = scalar_lea.hbm %s956_s0, %s566_s30 }
  0x13   : > { %s125_s6 = scalar_lea.vmem [#allocation2], %s492_s29  ;;  %s131_s8 = sshll.u32 %s130_s5, 4  ;;  %s132_s8 = int_to_ptr.hbm [resolvable:$true] %s131_s8 }
  0x14   : > { %s133_s7 = sshll.u32 %s125_s6, 4  ;;  %p890_p13 = pnand %p669_p11, %p32_p12  ;;  %s134_s7 = int_to_ptr.vmem [resolvable:$true] %s133_s7 }
  0x15   : > { %s122_s16 = scalar_lea.sflag [#allocation3], %s121_s28  ;;  %s736_s17 = sshra.s32 %s132_s8, 4  ;;  %s737_s17 = int_to_ptr.hbm [resolvable:$true] %s736_s17 }
  0x16   : > { %s738_s18 = scalar_lea.hbm %s737_s17, 64  ;;  %p740_p2 = pneg %p890_p13 }
  0x17   : > { %p739_p0 = scmp.ne.s32.totalorder %s737_s17, %s738_s18  ;;  %s743_s25 = scalar_lea.hbm %s956_s0, 128 }
  0x18   : > { %p744_p7 = scmp.lt.s32.totalorder %s737_s17, %s956_s0  ;;  %p745_p8 = scmp.lt.s32.totalorder %s743_s25, %s738_s18 }
  0x19   : > { %p741_p3 = pnand %p740_p2, %p739_p0 }
  0x1a   : > { %p746_p9 = por %p745_p8, %p744_p7 }
  0x1b   : > { %p742_p6 = pneg %p741_p3 }
  0x1d   : > { %p747_p10 = pnand %p746_p9, %p742_p6 }
  0x1f   : > { %750 = shalt.err (!%p747_p10)
}
  0x20   : > { %667 = dma.hbm_to_vmem [thread:$0]  (!%p890_p13), %s132_s8, 1024, %s134_s7, %s122_s16, %s807_s23, %s807_s23, %s808_s24  }
  0x21   : > { %145 = sbr.rel (%p861_p5) target bundleno = 236 (0xec), region = 28  ;;  %s147_s28 = sand.u32 (!%p861_p5), 1, %s796_s10  }
  0x22   : > { %s496_s30 = sshll.u32 (!%p861_p5), %s147_s28, 6  ;;  %s148_s3 = scalar_lea.sflag (!%p861_p5), [#allocation3], %s147_s28 }
  0x23   : > { %s910_s4 = scalar_lea.vmem (!%p861_p5), [#allocation2], %s496_s30 }
  0x26   : > { %783 = dma.done.wait (%p854_p4), %s148_s3, 1024  }
  0x27   : > { %785 = vsyncadd (%p854_p4), %s148_s3, 4294966272 }
  0x28   : > { %787 = dma.done.wait (%p846_p1), [#allocation5], 1024  }
  0x29   : > { %789 = vsyncadd (%p846_p1), [#allocation5], 4294966272  ;;  %v582_v0 = vld [vmem:[#allocation4 + $0x38] sm:$0xff]  ;;  %v581_v1 = vld [vmem:[#allocation4 + $0x30] sm:$0xff]  ;;  %s498_s14 = sshll.u32 %s487_s13, 4 }
  0x2a   : > { %313 = vmatpush.bf16.msra.mxu0 %v582_v0  ;;  %630 = vmatpush.bf16.msra.mxu1 %v582_v0  ;;  %v580_v2 = vld [vmem:[#allocation4 + $0x28] sm:$0xff]  ;;  %v579_v3 = vld [vmem:[#allocation4 + $0x20] sm:$0xff]  ;;  %v578_v4 = vld [vmem:[#allocation4 + $0x18] sm:$0xff]  ;;  %p180_p1 = scmp.lt.s32.totalorder %s498_s14, 31 }
  0x2b   : > { %631 = vmatpush.bf16.msra.mxu2 %v582_v0  ;;  %632 = vmatpush.bf16.msra.mxu3 %v582_v0  ;;  %v577_v5 = vld [vmem:[#allocation4 + $0x10] sm:$0xff]  ;;  %v576_v6 = vld [vmem:[#allocation4 + $0x8] sm:$0xff]  ;;  %v575_v7 = vld [vmem:[#allocation4] sm:$0xff] }
  0x2c   : > { %v567_v8 = vld [vmem:[%s910_s4] sm:$0xff]  ;;  %v569_v9 = vld [vmem:[%s910_s4 + $0x10] sm:$0xff]  ;;  %v568_v12 = vld [vmem:[%s910_s4 + $0x8] sm:$0xff]  ;;  %s968_s14 = smov (!%p180_p1, %s498_s14), 31 }
  0x2d   : > { %v571_v10 = vld [vmem:[%s910_s4 + $0x20] sm:$0xff]  ;;  %v573_v11 = vld [vmem:[%s910_s4 + $0x30] sm:$0xff]  ;;  %v570_v13 = vld [vmem:[%s910_s4 + $0x18] sm:$0xff]  ;;  %s499_s15 = sshll.u32 %s968_s14, 2 }
  0x2e   : > { %314 = vmatpush.bf16.msra.mxu0 %v581_v1  ;;  %633 = vmatpush.bf16.msra.mxu1 %v581_v1  ;;  %v572_v14 = vld [vmem:[%s910_s4 + $0x28] sm:$0xff]  ;;  %v574_v15 = vld [vmem:[%s910_s4 + $0x38] sm:$0xff]  ;;  %s933_s24 = scalar_lea.vmem %s958_s2, %s499_s15 }
  0x2f   : > { %634 = vmatpush.bf16.msra.mxu2 %v581_v1  ;;  %635 = vmatpush.bf16.msra.mxu3 %v581_v1 }
  0x32   : > { %315 = vmatpush.bf16.msra.mxu0 %v580_v2  ;;  %636 = vmatpush.bf16.msra.mxu1 %v580_v2 }
  0x33   : > { %637 = vmatpush.bf16.msra.mxu2 %v580_v2  ;;  %638 = vmatpush.bf16.msra.mxu3 %v580_v2 }
  0x36   : > { %316 = vmatpush.bf16.msra.mxu0 %v579_v3  ;;  %639 = vmatpush.bf16.msra.mxu1 %v579_v3 }
  0x37   : > { %640 = vmatpush.bf16.msra.mxu2 %v579_v3  ;;  %641 = vmatpush.bf16.msra.mxu3 %v579_v3 }
  0x3a   : > { %317 = vmatpush.bf16.msra.mxu0 %v578_v4  ;;  %642 = vmatpush.bf16.msra.mxu1 %v578_v4 }
  0x3b   : > { %643 = vmatpush.bf16.msra.mxu2 %v578_v4  ;;  %644 = vmatpush.bf16.msra.mxu3 %v578_v4 }
  0x3e   : > { %318 = vmatpush.bf16.msra.mxu0 %v577_v5  ;;  %645 = vmatpush.bf16.msra.mxu1 %v577_v5 }
  0x3f   : > { %646 = vmatpush.bf16.msra.mxu2 %v577_v5  ;;  %647 = vmatpush.bf16.msra.mxu3 %v577_v5 }
  0x42   : > { %319 = vmatpush.bf16.msra.mxu0 %v576_v6  ;;  %648 = vmatpush.bf16.msra.mxu1 %v576_v6 }
  0x43   : > { %649 = vmatpush.bf16.msra.mxu2 %v576_v6  ;;  %650 = vmatpush.bf16.msra.mxu3 %v576_v6 }
  0x46   : > { %320 = vmatpush.bf16.msra.mxu0 %v575_v7  ;;  %651 = vmatpush.bf16.msra.mxu1 %v575_v7 }
  0x47   : > { %652 = vmatpush.bf16.msra.mxu2 %v575_v7  ;;  %653 = vmatpush.bf16.msra.mxu3 %v575_v7 }
  0x49   : > { %321 = vmatmul.bf16.vlgmr.msra.gmra.mxu0 %v567_v8  ;;  %331 = vmatmul.bf16.vlgmr.msra.gmra.mxu1 %v569_v9 }
  0x4a   : > { %341 = vmatmul.bf16.vlgmr.msra.gmra.mxu2 %v571_v10  ;;  %351 = vmatmul.bf16.vlgmr.msra.gmra.mxu3 %v573_v11 }
  0x59   : > { %326 = vmatmul.bf16.gmra.mxu0 %v568_v12  ;;  %336 = vmatmul.bf16.gmra.mxu1 %v570_v13 }
  0x5a   : > { %346 = vmatmul.bf16.gmra.mxu2 %v572_v14  ;;  %356 = vmatmul.bf16.gmra.mxu3 %v574_v15 }
  0xc6   : > { %v322_v16 = vpop.f32.mrf.mxu0  ;;  %v332_v17 = vpop.f32.mrf.mxu1 }
  0xc7   : > { %v362_v22 = vmax.f32 %v322_v16, 0.0  ;;  %v366_v23 = vmax.f32 %v332_v17, 0.0 }
  0xcd   : > { %v342_v18 = vpop.f32.mrf.mxu2  ;;  %v352_v19 = vpop.f32.mrf.mxu3 }
  0xce   : > { %v324_v20 = vpop.f32.mrf.mxu0  ;;  %v334_v21 = vpop.f32.mrf.mxu1  ;;  %v370_v30 = vmax.f32 %v342_v18, 0.0  ;;  %v374_v31 = vmax.f32 %v352_v19, 0.0 }
  0xcf   : > { %v363_v24 = vmax.f32 %v324_v20, 0.0  ;;  %v367_v25 = vmax.f32 %v334_v21, 0.0 }
  0xd1   : > { %v586_v26 = vpack.c.bf16 %v363_v24, %v362_v22  ;;  %v596_v27 = vpack.c.bf16 %v367_v25, %v366_v23 }
  0xd3   : > { %587 = vst [vmem:[%s933_s24] sm:$0xff] %v586_v26  }
  0xd4   : > { %624 = vst [vmem:[%s933_s24 + $0x10] sm:$0xff] %v596_v27  }
  0xd5   : > { %v344_v28 = vpop.f32.mrf.mxu2  ;;  %v354_v29 = vpop.f32.mrf.mxu3 }
  0xd6   : > { %v371_v32 = vmax.f32 %v344_v28, 0.0  ;;  %v375_v33 = vmax.f32 %v354_v29, 0.0  ;;  %v327_v34 = vpop.f32.mrf.mxu0  ;;  %v337_v35 = vpop.f32.mrf.mxu1 }
  0xd7   : > { %v364_v42 = vmax.f32 %v327_v34, 0.0  ;;  %v368_v43 = vmax.f32 %v337_v35, 0.0 }
  0xd8   : > { %v606_v36 = vpack.c.bf16 %v371_v32, %v370_v30  ;;  %v616_v37 = vpack.c.bf16 %v375_v33, %v374_v31 }
  0xda   : > { %626 = vst [vmem:[%s933_s24 + $0x20] sm:$0xff] %v606_v36  }
  0xdb   : > { %628 = vst [vmem:[%s933_s24 + $0x30] sm:$0xff] %v616_v37  }
  0xdd   : > { %v347_v38 = vpop.f32.mrf.mxu2  ;;  %v357_v39 = vpop.f32.mrf.mxu3 }
  0xde   : > { %v329_v40 = vpop.f32.mrf.mxu0  ;;  %v339_v41 = vpop.f32.mrf.mxu1  ;;  %v372_v50 = vmax.f32 %v347_v38, 0.0  ;;  %v376_v51 = vmax.f32 %v357_v39, 0.0 }
  0xdf   : > { %v365_v44 = vmax.f32 %v329_v40, 0.0  ;;  %v369_v45 = vmax.f32 %v339_v41, 0.0 }
  0xe1   : > { %v591_v46 = vpack.c.bf16 %v365_v44, %v364_v42  ;;  %v601_v47 = vpack.c.bf16 %v369_v45, %v368_v43 }
  0xe3   : > { %623 = vst [vmem:[%s933_s24 + $0x8] sm:$0xff] %v591_v46  }
  0xe4   : > { %625 = vst [vmem:[%s933_s24 + $0x18] sm:$0xff] %v601_v47  }
  0xe5   : > { %v349_v48 = vpop.f32.mrf.mxu2  ;;  %v359_v49 = vpop.f32.mrf.mxu3 }
  0xe6   : > { %v373_v52 = vmax.f32 %v349_v48, 0.0  ;;  %v377_v53 = vmax.f32 %v359_v49, 0.0 }
  0xe8   : > { %v611_v54 = vpack.c.bf16 %v373_v52, %v372_v50  ;;  %v621_v55 = vpack.c.bf16 %v377_v53, %v376_v51 }
  0xea   : > { %627 = vst [vmem:[%s933_s24 + $0x28] sm:$0xff] %v611_v54  }
  0xeb   : > { %629 = vst [vmem:[%s933_s24 + $0x38] sm:$0xff] %v621_v55  }
  0xec PF: > { %p13_p4 = scmp.ge.s32.totalorder %s870_s22, 4   ;;  %s963_s9 = smov %s796_s10 }
  0xed   : > { %s964_s10 = smov %s800_s11  ;;  %s965_s11 = smov %s883_s27 }
  0xee   : > { %s966_s12 = smov %s870_s22  ;;  %15 = sbr.rel (!%p13_p4) target bundleno = 4 (0x4), region = 72 }
  0xf3   :  { %432 = vsyncpa [#allocation3], 1 }
  0xf4   :  { %434 = vsyncpa [#allocation3 + $0x1], 1 }
  0xf5   :  { %435 = vsyncpa [#allocation5], 1 }

// kernel: gcn_forward_padded.4
= control target key start
LH: loop header
LB: loop body
LE: loop exit
PB: predicated region body
PF: predicated region fallthrough
CT: control target
= control target key end

     0   :  { %s1282_s15 = smov 0   ;;  %s1284_s16 = smov 0   ;;  %s1459_s0 = inlined_call_operand.vmem [shape: bf16[256,256], index: 0, kind: input, shape index: {}]   ;;  %s1460_s1 = inlined_call_operand.vmem [shape: bf16[256,128], index: 1, kind: input, shape index: {}]   ;;  %s1461_s2 = inlined_call_operand.vmem [shape: f32[1,128], index: 2, kind: input, shape index: {}]   ;;  %s1462_s3 = inlined_call_operand.vmem [shape: bf16[128,128], index: 3, kind: input, shape index: {}]   ;;  %s1463_s4 = inlined_call_operand.vmem [shape: bf16[256,128], index: 4, kind: output, shape index: {}]  }
   0x1   :  { %s1286_s17 = smov 0  }
   0x2 LB: > { %s26_s18 = sadd.s32 1, %s1251_s16  ;;  %p928_p0 = scmp.ge.s32.totalorder %s1255_s17, 1  ;;  %s1255_s17 = sphi %s1286_s17, %s14_s17   ;;  %s1251_s16 = sphi %s1284_s16, %s1465_s16   ;;  %s1247_s15 = sphi %s1282_s15, %s1464_s15  }
   0x3   : > { %p28_p1 = scmp.ge.s32.totalorder %s26_s18, 2  ;;  %p183_p2 = scmp.lt.s32.totalorder %s1255_s17, 3 }
   0x5   : > { %s1467_s18 = smov (%p28_p1, %s26_s18), 0  ;;  %p184_p3 = pnand %p928_p0, %p183_p2 }
   0x6   : > { %s929_s5 = sshll.u32 (!%p184_p3), %s1247_s15, 4 }
   0x7   : > { %187 = sbr.rel (%p184_p3) target bundleno = 412 (0x19c), region = 36  ;;  %p216_p4 = scmp.lt.s32.totalorder (!%p184_p3), %s929_s5, 31 }
   0xc   : > { %v1104_v0 = vld [vmem:[%s1460_s1 + $0x38] sm:$0xff]  ;;  %v1103_v2 = vld [vmem:[%s1460_s1 + $0x30] sm:$0xff]  ;;  %v1102_v4 = vld [vmem:[%s1460_s1 + $0x28] sm:$0xff]  ;;  %s1469_s5 = smov (!%p216_p4, %s929_s5), 31 }
   0xd   : > { %v1112_v1 = vld [vmem:[%s1460_s1 + $0x78] sm:$0xff]  ;;  %497 = vmatpush.bf16.msra.mxu0 %v1104_v0  ;;  %1184 = vmatpush.bf16.msra.mxu3 %v1104_v0  ;;  %v1111_v3 = vld [vmem:[%s1460_s1 + $0x70] sm:$0xff]  ;;  %v1110_v5 = vld [vmem:[%s1460_s1 + $0x68] sm:$0xff]  ;;  %s1096_s21 = sshll.u32 %s1469_s5, 3  ;;  %s933_s29 = sshll.u32 %s1469_s5, 2 }
   0xe   : > { %546 = vmatpush.bf16.msra.mxu1 %v1112_v1  ;;  %v1101_v6 = vld [vmem:[%s1460_s1 + $0x20] sm:$0xff]  ;;  %v1100_v8 = vld [vmem:[%s1460_s1 + $0x18] sm:$0xff]  ;;  %v1099_v10 = vld [vmem:[%s1460_s1 + $0x10] sm:$0xff]  ;;  %s1348_s26 = scalar_lea.vmem %s1459_s0, %s1096_s21  ;;  %s1440_s7 = scalar_lea.vmem %s1463_s4, %s933_s29 }
   0xf   : > { %v1109_v7 = vld [vmem:[%s1460_s1 + $0x60] sm:$0xff]  ;;  %v1108_v9 = vld [vmem:[%s1460_s1 + $0x58] sm:$0xff]  ;;  %v1107_v11 = vld [vmem:[%s1460_s1 + $0x50] sm:$0xff] }
  0x10   : > { %v1098_v12 = vld [vmem:[%s1460_s1 + $0x8] sm:$0xff]  ;;  %v1097_v14 = vld [vmem:[%s1460_s1] sm:$0xff]  ;;  %v944_v25 = vld [vmem:[%s1348_s26 + $0x10] sm:$0xf] }
  0x11   : > { %498 = vmatpush.bf16.msra.mxu0 %v1103_v2  ;;  %1185 = vmatpush.bf16.msra.mxu3 %v1103_v2  ;;  %v1106_v13 = vld [vmem:[%s1460_s1 + $0x48] sm:$0xff]  ;;  %v936_v15 = vld [vmem:[%s1348_s26] sm:$0xf]  ;;  %v1113_v20 = vld [vmem:[%s1348_s26 + $0x4] sm:$0xf] }
  0x12   : > { %547 = vmatpush.bf16.msra.mxu1 %v1111_v3  ;;  %v1114_v16 = vld [vmem:[%s1348_s26 + $0x4] sm:$0xf0]  ;;  %v984_v17 = vld [vmem:[%s1348_s26 + $0x60] sm:$0xf]  ;;  %v938_v21 = vld [vmem:[%s1348_s26 + $0x8] sm:$0xf0] }
  0x13   : > { %v1126_v18 = vld [vmem:[%s1348_s26 + $0x64] sm:$0xf0]  ;;  %v1105_v19 = vld [vmem:[%s1460_s1 + $0x40] sm:$0xff]  ;;  %v937_v22 = vor.u32 %v1114_v16, %v936_v15  ;;  %v941_v24 = vor.u32 %v1113_v20, %v938_v21  ;;  %v1116_v26 = vld [vmem:[%s1348_s26 + $0x14] sm:$0xf0] }
  0x14   : > { %v985_v23 = vor.u32 %v1126_v18, %v984_v17  ;;  %v992_v27 = vld [vmem:[%s1348_s26 + $0x70] sm:$0xf]  ;;  %v1128_v28 = vld [vmem:[%s1348_s26 + $0x74] sm:$0xf0]  ;;  %v1115_v29 = vld [vmem:[%s1348_s26 + $0x14] sm:$0xf]  ;;  %v945_v31 = vor.u32 %v1116_v26, %v944_v25 }
  0x15   : > { %499 = vmatpush.bf16.msra.mxu0 %v1102_v4  ;;  %1186 = vmatpush.bf16.msra.mxu3 %v1102_v4  ;;  %v946_v30 = vld [vmem:[%s1348_s26 + $0x18] sm:$0xf0]  ;;  %v993_v32 = vor.u32 %v1128_v28, %v992_v27  ;;  %v952_v34 = vld [vmem:[%s1348_s26 + $0x20] sm:$0xf]  ;;  %v1118_v35 = vld [vmem:[%s1348_s26 + $0x24] sm:$0xf0] }
  0x16   : > { %548 = vmatpush.bf16.msra.mxu1 %v1110_v5  ;;  %v949_v33 = vor.u32 %v1115_v29, %v946_v30  ;;  %v1125_v36 = vld [vmem:[%s1348_s26 + $0x64] sm:$0xf]  ;;  %v986_v37 = vld [vmem:[%s1348_s26 + $0x68] sm:$0xf0]  ;;  %v953_v40 = vor.u32 %v1118_v35, %v952_v34  ;;  %v960_v43 = vld [vmem:[%s1348_s26 + $0x30] sm:$0xf] }
  0x17   : > { %v1117_v38 = vld [vmem:[%s1348_s26 + $0x24] sm:$0xf]  ;;  %v954_v39 = vld [vmem:[%s1348_s26 + $0x28] sm:$0xf0]  ;;  %v989_v41 = vor.u32 %v1125_v36, %v986_v37  ;;  %v1120_v44 = vld [vmem:[%s1348_s26 + $0x34] sm:$0xf0] }
  0x18   : > { %v957_v42 = vor.u32 %v1117_v38, %v954_v39  ;;  %v1127_v45 = vld [vmem:[%s1348_s26 + $0x74] sm:$0xf]  ;;  %v994_v46 = vld [vmem:[%s1348_s26 + $0x78] sm:$0xf0]  ;;  %v961_v49 = vor.u32 %v1120_v44, %v960_v43  ;;  %v1134_v54 = vld [vmem:[%s1462_s3 + $0x28] sm:$0xff] }
  0x19   : > { %500 = vmatpush.bf16.msra.mxu0 %v1101_v6  ;;  %1187 = vmatpush.bf16.msra.mxu3 %v1101_v6  ;;  %v1119_v47 = vld [vmem:[%s1348_s26 + $0x34] sm:$0xf]  ;;  %v962_v48 = vld [vmem:[%s1348_s26 + $0x38] sm:$0xf0]  ;;  %v997_v50 = vor.u32 %v1127_v45, %v994_v46  ;;  %v968_v55 = vld [vmem:[%s1348_s26 + $0x40] sm:$0xf] }
  0x1a   : > { %549 = vmatpush.bf16.msra.mxu1 %v1109_v7  ;;  %v965_v51 = vor.u32 %v1119_v47, %v962_v48  ;;  %v1136_v52 = vld [vmem:[%s1462_s3 + $0x38] sm:$0xff]  ;;  %v1135_v53 = vld [vmem:[%s1462_s3 + $0x30] sm:$0xff]  ;;  %v1122_v56 = vld [vmem:[%s1348_s26 + $0x44] sm:$0xf0] }
  0x1b   : > { %754 = vmatpush.bf16.msra.mxu2 %v1136_v52  ;;  %v1121_v57 = vld [vmem:[%s1348_s26 + $0x44] sm:$0xf]  ;;  %v970_v58 = vld [vmem:[%s1348_s26 + $0x48] sm:$0xf0]  ;;  %v969_v60 = vor.u32 %v1122_v56, %v968_v55  ;;  %v976_v62 = vld [vmem:[%s1348_s26 + $0x50] sm:$0xf] }
  0x1c   : > { %v1133_v59 = vld [vmem:[%s1462_s3 + $0x20] sm:$0xff]  ;;  %v973_v61 = vor.u32 %v1121_v57, %v970_v58  ;;  %v1124_v63 = vld [vmem:[%s1348_s26 + $0x54] sm:$0xf0]  ;;  %v1123_v0 = vld [vmem:[%s1348_s26 + $0x54] sm:$0xf] }
  0x1d   : > { %501 = vmatpush.bf16.msra.mxu0 %v1100_v8  ;;  %1188 = vmatpush.bf16.msra.mxu3 %v1100_v8  ;;  %v977_v2 = vor.u32 %v1124_v63, %v976_v62  ;;  %v1132_v4 = vld [vmem:[%s1462_s3 + $0x18] sm:$0xff]  ;;  %v1130_v6 = vld [vmem:[%s1462_s3 + $0x8] sm:$0xff] }
  0x1e   : > { %550 = vmatpush.bf16.msra.mxu1 %v1108_v9 }
  0x1f   : > { %755 = vmatpush.bf16.msra.mxu2 %v1135_v53 }
  0x21   : > { %502 = vmatpush.bf16.msra.mxu0 %v1099_v10  ;;  %1189 = vmatpush.bf16.msra.mxu3 %v1099_v10 }
  0x22   : > { %551 = vmatpush.bf16.msra.mxu1 %v1107_v11 }
  0x23   : > { %756 = vmatpush.bf16.msra.mxu2 %v1134_v54 }
  0x25   : > { %503 = vmatpush.bf16.msra.mxu0 %v1098_v12  ;;  %1190 = vmatpush.bf16.msra.mxu3 %v1098_v12 }
  0x26   : > { %552 = vmatpush.bf16.msra.mxu1 %v1106_v13 }
  0x27   : > { %757 = vmatpush.bf16.msra.mxu2 %v1133_v59 }
  0x29   : > { %504 = vmatpush.bf16.msra.mxu0 %v1097_v14  ;;  %1191 = vmatpush.bf16.msra.mxu3 %v1097_v14 }
  0x2a   : > { %553 = vmatpush.bf16.msra.mxu1 %v1105_v19 }
  0x2b   : > { %758 = vmatpush.bf16.msra.mxu2 %v1132_v4 }
  0x2c   : > { %505 = vmatmul.bf16.vlgmr.msra.gmra.mxu0 %v937_v22  ;;  %535 = vmatmul.bf16.vlgmr.msra.gmra.mxu3 %v985_v23 }
  0x2d   : > { %1192 = vmatpush.bf16.msrb.mxu3 %v1112_v1  ;;  %554 = vmatmul.bf16.vlgmr.msra.gmra.mxu1 %v941_v24  ;;  %v978_v1 = vld [vmem:[%s1348_s26 + $0x58] sm:$0xf0] }
  0x31   : > { %1193 = vmatpush.bf16.msrb.mxu3 %v1111_v3  ;;  %v981_v3 = vor.u32 %v1123_v0, %v978_v1 }
  0x35   : > { %1194 = vmatpush.bf16.msrb.mxu3 %v1110_v5  ;;  %v1131_v5 = vld [vmem:[%s1462_s3 + $0x10] sm:$0xff] }
  0x36   : > { %759 = vmatpush.bf16.msra.mxu2 %v1131_v5 }
  0x39   : > { %1195 = vmatpush.bf16.msrb.mxu3 %v1109_v7  ;;  %v1129_v7 = vld [vmem:[%s1462_s3] sm:$0xff] }
  0x3a   : > { %760 = vmatpush.bf16.msra.mxu2 %v1130_v6 }
  0x3c   : > { %510 = vmatmul.bf16.gmra.mxu0 %v945_v31  ;;  %540 = vmatmul.bf16.gmra.mxu3 %v993_v32 }
  0x3d   : > { %1196 = vmatpush.bf16.msrb.mxu3 %v1108_v9  ;;  %559 = vmatmul.bf16.gmra.mxu1 %v949_v33 }
  0x3e   : > { %761 = vmatpush.bf16.msra.mxu2 %v1129_v7 }
  0x41   : > { %1197 = vmatpush.bf16.msrb.mxu3 %v1107_v11  ;;  %v1418_v11 = vld [vmem:[%s1461_s2] ss:$0 sm:$0xff] }
  0x45   : > { %1198 = vmatpush.bf16.msrb.mxu3 %v1106_v13 }
  0x49   : > { %1199 = vmatpush.bf16.msrb.mxu3 %v1105_v19 }
  0x4c   : > { %515 = vmatmul.bf16.gmra.mxu0 %v953_v40  ;;  %584 = vmatmul.bf16.vlgmr.msrb.gmra.mxu3 %v989_v41 }
  0x4d   : > { %564 = vmatmul.bf16.gmra.mxu1 %v957_v42  ;;  %1200 = vmatpush.bf16.msra.mxu3 %v1136_v52 }
  0x51   : > { %1201 = vmatpush.bf16.msra.mxu3 %v1135_v53 }
  0x55   : > { %1202 = vmatpush.bf16.msra.mxu3 %v1134_v54 }
  0x59   : > { %1203 = vmatpush.bf16.msra.mxu3 %v1133_v59 }
  0x5c   : > { %520 = vmatmul.bf16.gmra.mxu0 %v961_v49  ;;  %589 = vmatmul.bf16.gmra.mxu3 %v997_v50 }
  0x5d   : > { %569 = vmatmul.bf16.gmra.mxu1 %v965_v51  ;;  %1204 = vmatpush.bf16.msra.mxu3 %v1132_v4 }
  0x61   : > { %1205 = vmatpush.bf16.msra.mxu3 %v1131_v5 }
  0x65   : > { %1206 = vmatpush.bf16.msra.mxu3 %v1130_v6 }
  0x69   : > { %1207 = vmatpush.bf16.msra.mxu3 %v1129_v7 }
  0x6c   : > { %525 = vmatmul.bf16.gmra.mxu0 %v969_v60 }
  0x6d   : > { %574 = vmatmul.bf16.gmra.mxu1 %v973_v61 }
  0x7c   : > { %530 = vmatmul.bf16.gmra.mxu0 %v977_v2 }
  0x7d   : > { %579 = vmatmul.bf16.gmra.mxu1 %v981_v3 }
  0xa9   : > { %v506_v8 = vpop.f32.mrf.mxu0 }
  0xaa   : > { %v555_v9 = vpop.f32.mrf.mxu1 }
  0xab   : > { %v556_v10 = vadd.f32 %v555_v9, %v506_v8 }
  0xad   : > { %v650_v15 = vadd.f32 %v1418_v11, %v556_v10 }
  0xaf   : > { %v536_v12 = vpop.f32.mrf.mxu3  ;;  %v666_v18 = vmax.f32 %v650_v15, 0.0 }
  0xb1   : > { %v508_v13 = vpop.f32.mrf.mxu0 }
  0xb2   : > { %v557_v14 = vpop.f32.mrf.mxu1 }
  0xb3   : > { %v558_v16 = vadd.f32 %v557_v14, %v508_v13 }
  0xb5   : > { %v651_v17 = vadd.f32 %v1418_v11, %v558_v16 }
  0xb7   : > { %v667_v19 = vmax.f32 %v651_v17, 0.0  ;;  %v538_v20 = vpop.f32.mrf.mxu3 }
  0xb9   : > { %v511_v21 = vpop.f32.mrf.mxu0  ;;  %v682_v22 = vpack.c.bf16 %v667_v19, %v666_v18 }
  0xba   : > { %v560_v23 = vpop.f32.mrf.mxu1 }
  0xbb   : > { %762 = vmatmul.bf16.vlgmr.msra.gmra.mxu2 %v682_v22  ;;  %v561_v24 = vadd.f32 %v560_v23, %v511_v21 }
  0xbd   : > { %v652_v28 = vadd.f32 %v1418_v11, %v561_v24 }
  0xbf   : > { %v541_v25 = vpop.f32.mrf.mxu3  ;;  %v668_v31 = vmax.f32 %v652_v28, 0.0 }
  0xc1   : > { %v513_v26 = vpop.f32.mrf.mxu0 }
  0xc2   : > { %v562_v27 = vpop.f32.mrf.mxu1 }
  0xc3   : > { %v563_v29 = vadd.f32 %v562_v27, %v513_v26 }
  0xc5   : > { %v653_v30 = vadd.f32 %v1418_v11, %v563_v29 }
  0xc7   : > { %v669_v32 = vmax.f32 %v653_v30, 0.0  ;;  %v543_v33 = vpop.f32.mrf.mxu3 }
  0xc9   : > { %v516_v34 = vpop.f32.mrf.mxu0  ;;  %v683_v35 = vpack.c.bf16 %v669_v32, %v668_v31 }
  0xca   : > { %v565_v36 = vpop.f32.mrf.mxu1 }
  0xcb   : > { %767 = vmatmul.bf16.gmra.mxu2 %v683_v35  ;;  %v566_v37 = vadd.f32 %v565_v36, %v516_v34 }
  0xcd   : > { %v654_v41 = vadd.f32 %v1418_v11, %v566_v37 }
  0xcf   : > { %v585_v38 = vpop.f32.mrf.mxu3  ;;  %v670_v45 = vmax.f32 %v654_v41, 0.0 }
  0xd0   : > { %v586_v43 = vadd.f32 %v585_v38, %v536_v12 }
  0xd1   : > { %v518_v39 = vpop.f32.mrf.mxu0 }
  0xd2   : > { %v567_v40 = vpop.f32.mrf.mxu1  ;;  %v662_v48 = vadd.f32 %v1418_v11, %v586_v43 }
  0xd3   : > { %v568_v42 = vadd.f32 %v567_v40, %v518_v39 }
  0xd4   : > { %v678_v54 = vmax.f32 %v662_v48, 0.0 }
  0xd5   : > { %v655_v44 = vadd.f32 %v1418_v11, %v568_v42 }
  0xd7   : > { %v671_v46 = vmax.f32 %v655_v44, 0.0  ;;  %v587_v47 = vpop.f32.mrf.mxu3 }
  0xd8   : > { %v588_v49 = vadd.f32 %v587_v47, %v538_v20 }
  0xd9   : > { %v521_v50 = vpop.f32.mrf.mxu0  ;;  %v684_v51 = vpack.c.bf16 %v671_v46, %v670_v45 }
  0xda   : > { %v663_v52 = vadd.f32 %v1418_v11, %v588_v49  ;;  %v570_v53 = vpop.f32.mrf.mxu1 }
  0xdb   : > { %772 = vmatmul.bf16.gmra.mxu2 %v684_v51  ;;  %v571_v57 = vadd.f32 %v570_v53, %v521_v50 }
  0xdc   : > { %v679_v55 = vmax.f32 %v663_v52, 0.0 }
  0xdd   : > { %v656_v61 = vadd.f32 %v1418_v11, %v571_v57 }
  0xde   : > { %v688_v56 = vpack.c.bf16 %v679_v55, %v678_v54 }
  0xdf   : > { %v590_v58 = vpop.f32.mrf.mxu3  ;;  %v672_v1 = vmax.f32 %v656_v61, 0.0 }
  0xe0   : > { %792 = vmatmul.bf16.vlgmr.msra.gmra.mxu3 %v688_v56  ;;  %v591_v63 = vadd.f32 %v590_v58, %v541_v25 }
  0xe1   : > { %v523_v59 = vpop.f32.mrf.mxu0 }
  0xe2   : > { %v572_v60 = vpop.f32.mrf.mxu1  ;;  %v664_v4 = vadd.f32 %v1418_v11, %v591_v63 }
  0xe3   : > { %v573_v62 = vadd.f32 %v572_v60, %v523_v59 }
  0xe4   : > { %v680_v10 = vmax.f32 %v664_v4, 0.0 }
  0xe5   : > { %v657_v0 = vadd.f32 %v1418_v11, %v573_v62 }
  0xe7   : > { %v673_v2 = vmax.f32 %v657_v0, 0.0  ;;  %v592_v3 = vpop.f32.mrf.mxu3 }
  0xe8   : > { %v593_v5 = vadd.f32 %v592_v3, %v543_v33 }
  0xe9   : > { %v526_v6 = vpop.f32.mrf.mxu0  ;;  %v685_v7 = vpack.c.bf16 %v673_v2, %v672_v1 }
  0xea   : > { %v665_v8 = vadd.f32 %v1418_v11, %v593_v5  ;;  %v575_v9 = vpop.f32.mrf.mxu1 }
  0xeb   : > { %777 = vmatmul.bf16.gmra.mxu2 %v685_v7  ;;  %v576_v14 = vadd.f32 %v575_v9, %v526_v6 }
  0xec   : > { %v681_v12 = vmax.f32 %v665_v8, 0.0 }
  0xed   : > { %v658_v17 = vadd.f32 %v1418_v11, %v576_v14 }
  0xee   : > { %v689_v13 = vpack.c.bf16 %v681_v12, %v680_v10 }
  0xef   : > { %v674_v20 = vmax.f32 %v658_v17, 0.0 }
  0xf0   : > { %797 = vmatmul.bf16.gmra.mxu3 %v689_v13 }
  0xf1   : > { %v528_v15 = vpop.f32.mrf.mxu0 }
  0xf2   : > { %v577_v16 = vpop.f32.mrf.mxu1 }
  0xf3   : > { %v578_v18 = vadd.f32 %v577_v16, %v528_v15 }
  0xf5   : > { %v659_v19 = vadd.f32 %v1418_v11, %v578_v18 }
  0xf7   : > { %v675_v21 = vmax.f32 %v659_v19, 0.0 }
  0xf9   : > { %v531_v22 = vpop.f32.mrf.mxu0  ;;  %v686_v23 = vpack.c.bf16 %v675_v21, %v674_v20 }
  0xfa   : > { %v580_v24 = vpop.f32.mrf.mxu1 }
  0xfb   : > { %782 = vmatmul.bf16.gmra.mxu2 %v686_v23  ;;  %v581_v25 = vadd.f32 %v580_v24, %v531_v22 }
  0xfd   : > { %v660_v28 = vadd.f32 %v1418_v11, %v581_v25 }
  0xff   : > { %v676_v31 = vmax.f32 %v660_v28, 0.0 }
 0x101   : > { %v533_v26 = vpop.f32.mrf.mxu0 }
 0x102   : > { %v582_v27 = vpop.f32.mrf.mxu1 }
 0x103   : > { %v583_v29 = vadd.f32 %v582_v27, %v533_v26 }
 0x105   : > { %v661_v30 = vadd.f32 %v1418_v11, %v583_v29 }
 0x107   : > { %v677_v32 = vmax.f32 %v661_v30, 0.0 }
 0x109   : > { %v687_v33 = vpack.c.bf16 %v677_v32, %v676_v31 }
 0x10b   : > { %787 = vmatmul.bf16.gmra.mxu2 %v687_v33 }
 0x13e   : > { %v763_v34 = vpop.f32.mrf.mxu2 }
 0x13f   : > { %v803_v36 = vmax.f32 %v763_v34, 0.0 }
 0x146   : > { %v765_v35 = vpop.f32.mrf.mxu2 }
 0x147   : > { %v804_v37 = vmax.f32 %v765_v35, 0.0 }
 0x149   : > { %v1140_v38 = vpack.c.bf16 %v804_v37, %v803_v36 }
 0x14b   : > { %1141 = vst [vmem:[%s1440_s7] sm:$0xff] %v1140_v38  }
 0x14e   : > { %v768_v11 = vpop.f32.mrf.mxu2 }
 0x14f   : > { %v805_v40 = vmax.f32 %v768_v11, 0.0 }
 0x156   : > { %v770_v39 = vpop.f32.mrf.mxu2 }
 0x157   : > { %v806_v41 = vmax.f32 %v770_v39, 0.0 }
 0x159   : > { %v1145_v42 = vpack.c.bf16 %v806_v41, %v805_v40 }
 0x15b   : > { %1177 = vst [vmem:[%s1440_s7 + $0x8] sm:$0xff] %v1145_v42  }
 0x15e   : > { %v773_v43 = vpop.f32.mrf.mxu2 }
 0x15f   : > { %v807_v46 = vmax.f32 %v773_v43, 0.0 }
 0x163   : > { %v793_v44 = vpop.f32.mrf.mxu3 }
 0x164   : > { %v815_v50 = vmax.f32 %v793_v44, 0.0 }
 0x166   : > { %v775_v45 = vpop.f32.mrf.mxu2 }
 0x167   : > { %v808_v47 = vmax.f32 %v775_v45, 0.0 }
 0x169   : > { %v1150_v48 = vpack.c.bf16 %v808_v47, %v807_v46 }
 0x16b   : > { %1178 = vst [vmem:[%s1440_s7 + $0x10] sm:$0xff] %v1150_v48   ;;  %v795_v49 = vpop.f32.mrf.mxu3 }
 0x16c   : > { %v816_v51 = vmax.f32 %v795_v49, 0.0 }
 0x16e   : > { %v1170_v52 = vpack.c.bf16 %v816_v51, %v815_v50  ;;  %v778_v53 = vpop.f32.mrf.mxu2 }
 0x16f   : > { %v809_v56 = vmax.f32 %v778_v53, 0.0 }
 0x170   : > { %1182 = vst [vmem:[%s1440_s7 + $0x30] sm:$0xff] %v1170_v52  }
 0x173   : > { %v798_v54 = vpop.f32.mrf.mxu3 }
 0x174   : > { %v817_v60 = vmax.f32 %v798_v54, 0.0 }
 0x176   : > { %v780_v55 = vpop.f32.mrf.mxu2 }
 0x177   : > { %v810_v57 = vmax.f32 %v780_v55, 0.0 }
 0x179   : > { %v1155_v58 = vpack.c.bf16 %v810_v57, %v809_v56 }
 0x17b   : > { %1179 = vst [vmem:[%s1440_s7 + $0x18] sm:$0xff] %v1155_v58   ;;  %v800_v59 = vpop.f32.mrf.mxu3 }
 0x17c   : > { %v818_v61 = vmax.f32 %v800_v59, 0.0 }
 0x17e   : > { %v1175_v62 = vpack.c.bf16 %v818_v61, %v817_v60  ;;  %v783_v63 = vpop.f32.mrf.mxu2 }
 0x17f   : > { %v811_v1 = vmax.f32 %v783_v63, 0.0 }
 0x180   : > { %1183 = vst [vmem:[%s1440_s7 + $0x38] sm:$0xff] %v1175_v62  }
 0x186   : > { %v785_v0 = vpop.f32.mrf.mxu2 }
 0x187   : > { %v812_v2 = vmax.f32 %v785_v0, 0.0 }
 0x189   : > { %v1160_v3 = vpack.c.bf16 %v812_v2, %v811_v1 }
 0x18b   : > { %1180 = vst [vmem:[%s1440_s7 + $0x20] sm:$0xff] %v1160_v3  }
 0x18e   : > { %v788_v4 = vpop.f32.mrf.mxu2 }
 0x18f   : > { %v813_v6 = vmax.f32 %v788_v4, 0.0 }
 0x196   : > { %v790_v5 = vpop.f32.mrf.mxu2 }
 0x197   : > { %v814_v7 = vmax.f32 %v790_v5, 0.0 }
 0x199   : > { %v1165_v8 = vpack.c.bf16 %v814_v7, %v813_v6 }
 0x19b   : > { %1181 = vst [vmem:[%s1440_s7 + $0x28] sm:$0xff] %v1165_v8  }
 0x19c PF: > { %s14_s17 = sadd.s32 1, %s1255_s17   ;;  %s1464_s15 = smov %s1251_s16 }
 0x19d   : > { %p11_p5 = scmp.ge.s32.totalorder %s14_s17, 4   ;;  %s1465_s16 = smov %s1467_s18 }
 0x19f   :  { %13 = sbr.rel (!%p11_p5) target bundleno = 2 (0x2), region = 75 }

</bundles_post_ra>
